<compile_context>
chip_gen: v7x
topology: tpu7x:2x2x1
jax: 0.10.0
libtpu: 0.0.40
codegen_flags: <defaults>
</compile_context>

<pallas_src>
import numpy as np
import jax
import jax.numpy as jnp
from jax.experimental import pallas as pl
from jax.experimental.pallas import tpu as pltpu

# ---------------------------------------------------------------------------
# SRM filter bank, constructed exactly like the PyTorch module: float64 math,
# then cast to float32 (so baked constants are bit-identical to the Parameter).
# ---------------------------------------------------------------------------
_F1 = np.asarray([[0, 0, 0, 0, 0],
                  [0, -1, 2, -1, 0],
                  [0, 2, -4, 2, 0],
                  [0, -1, 2, -1, 0],
                  [0, 0, 0, 0, 0]], dtype=np.float64) / 4.0
_F2 = np.asarray([[-1, 2, -2, 2, -1],
                  [2, -6, 8, -6, 2],
                  [-2, 8, -12, 8, -2],
                  [2, -6, 8, -6, 2],
                  [-1, 2, -2, 2, -1]], dtype=np.float64) / 12.0
_F3 = np.asarray([[0, 0, 0, 0, 0],
                  [0, 0, 0, 0, 0],
                  [0, 1, -2, 1, 0],
                  [0, 0, 0, 0, 0],
                  [0, 0, 0, 0, 0]], dtype=np.float64) / 2.0
_FILTERS_F32 = np.stack([_F1, _F2, _F3]).astype(np.float32)     # (3, 5, 5)
_OC, _KH, _KW = _FILTERS_F32.shape

# Taps grouped by (ky, kx): each shifted slab is computed once and reused across
# every output channel with a nonzero tap at that position (37 nonzero taps total).
_TAPS = []
for _ky in range(_KH):
    for _kx in range(_KW):
        _entries = [(oc, float(_FILTERS_F32[oc, _ky, _kx]))
                    for oc in range(_OC) if _FILTERS_F32[oc, _ky, _kx] != 0.0]
        if _entries:
            _TAPS.append((_ky, _kx, _entries))


def build_srm_weight(inc: int = 3) -> jnp.ndarray:
    """(3, inc, 5, 5) weight bank, identical to the PyTorch module (used only for the reference check)."""
    return jnp.asarray(np.repeat(_FILTERS_F32[:, None, :, :], inc, axis=1))


def _srm_kernel(x_ref, o_ref, pad_ref):
    """x_ref: (Bt, C, H, W) input block; o_ref: (Bt, 3, H, W) output block;
    pad_ref: (Bt, H+4, W+4) VMEM scratch holding the zero-padded channel sum."""
    Bt, C, H, W = x_ref.shape

    # Build the padded channel-sum plane in VMEM.  Zeroing the scratch every grid
    # step keeps the border correct and keeps the batch axis safely "parallel"
    # (scratch is per-core on megacore, so no cross-step init dependence).
    pad_ref[...] = jnp.zeros_like(pad_ref)
    x_sum = x_ref[:, 0].astype(jnp.float32)
    for c in range(1, C):
        x_sum = x_sum + x_ref[:, c].astype(jnp.float32)
    pad_ref[:, 2:2 + H, 2:2 + W] = x_sum

    # Shift-and-accumulate with compile-time constant taps; (ky, kx) outer so each
    # shifted slab is loaded once and reused across output channels.  Pure VPU work.
    accs = [jnp.zeros((Bt, H, W), jnp.float32) for _ in range(_OC)]
    for ky, kx, entries in _TAPS:
        slab = pad_ref[:, ky:ky + H, kx:kx + W]
        for oc, coef in entries:
            accs[oc] = accs[oc] + coef * slab

    # nn.Hardtanh(-3, 3)
    for oc in range(_OC):
        o_ref[:, oc] = jnp.clip(accs[oc], -3.0, 3.0).astype(o_ref.dtype)


def _choose_block_batch(B, C, H, W, budget_bytes=4 * 1024 * 1024):
    """Largest per-step batch block whose (in + scratch + out) footprint stays modest,
    so double-buffered blocks fit the scoped VMEM on v5e/v6e/v7x alike."""
    per_img = 4 * (C * H * W + (H + 4) * (W + 4) + _OC * H * W)   # f32 bytes
    bt = max(1, min(B, budget_bytes // max(per_img, 1)))
    if B >= 2:                       # keep >= 2 grid steps so both v7x TensorCores get work
        bt = min(bt, max(1, B // 2))
    while B % bt != 0:               # make blocks tile the batch exactly
        bt -= 1
    return bt


def srm_conv2d_simple(x: jnp.ndarray) -> jnp.ndarray:
    """x: (B, C, H, W) float -> (B, 3, H, W); SRM 5x5 conv (stride 1, pad 2) + Hardtanh(-3, 3)."""
    B, C, H, W = x.shape
    Bt = _choose_block_batch(B, C, H, W)
    # TODO(synk): for very large H/W on v7x (64 MiB VMEM), add a row-stripe grid axis
    # with a 4-row halo instead of whole-image blocks.
    return pl.pallas_call(
        _srm_kernel,
        out_shape=jax.ShapeDtypeStruct((B, _OC, H, W), x.dtype),
        grid=(B // Bt,),
        in_specs=[pl.BlockSpec((Bt, C, H, W), lambda b: (b, 0, 0, 0))],
        out_specs=pl.BlockSpec((Bt, _OC, H, W), lambda b: (b, 0, 0, 0)),
        scratch_shapes=[pltpu.VMEM((Bt, H + 4, W + 4), jnp.float32)],
        compiler_params=pltpu.CompilerParams(
            dimension_semantics=("parallel",),
            vmem_limit_bytes=32 * 1024 * 1024,
        ),
    )(x)


if __name__ == "__main__":
    key = jax.random.PRNGKey(0)
    B, C, H, W = 2, 3, 16, 16        # inc=3, as in the module default
    x = jax.random.uniform(key, (B, C, H, W), dtype=jnp.float32)

    out = jax.block_until_ready(srm_conv2d_simple(x))

    # Reference: XLA conv with the full repeated weight bank + Hardtanh clamp
    # (validates both the conv and the channel-sum factorization).
    w = build_srm_weight(C)
    ref = jax.lax.conv_general_dilated(
        x, w, window_strides=(1, 1), padding=((2, 2), (2, 2)),
        dimension_numbers=("NCHW", "OIHW", "NCHW"))
    ref = jnp.clip(ref, -3.0, 3.0)

    assert out.shape == (B, _OC, H, W)
    assert jnp.allclose(out, ref, atol=1e-5), "mismatch vs reference conv"
    print("KERNEL_OK")
</pallas_src>

<mosaic_0001>
module attributes {stable_mosaic.version = 11 : i64} {
  func.func @_srm_kernel(%arg0: i32, %arg1: memref<1x3x16x16xf32, #tpu.memory_space<vmem>>, %arg2: memref<1x3x16x16xf32, #tpu.memory_space<vmem>>, %arg3: memref<1x20x20xf32, #tpu.memory_space<vmem>>) attributes {dimension_semantics = [#tpu.dimension_semantics<parallel>], iteration_bounds = array<i64: 2>, scalar_prefetch = 0 : i64, scratch_operands = 1 : i64, tpu.core_type = #tpu.core_type<tc>, window_params = [{transform_indices = @transform_0, window_bounds = array<i64: 1, 3, 16, 16>}, {transform_indices = @transform_1, window_bounds = array<i64: 1, 3, 16, 16>}]} {
    %cst = arith.constant 0.000000e+00 : f32
    %0 = vector.broadcast %cst : f32 to vector<1x20x20xf32>
    %c0 = arith.constant 0 : index
    %c0_0 = arith.constant 0 : index
    %c0_1 = arith.constant 0 : index
    %1 = vector.load %arg3[%c0, %c0_0, %c0_1] : memref<1x20x20xf32, #tpu.memory_space<vmem>>, vector<1x20x20xf32>
    tpu.vector_store %arg3[%c0, %c0_0, %c0_1], %0 {strides = array<i32>} : memref<1x20x20xf32, #tpu.memory_space<vmem>>, vector<1x20x20xf32>,
    %c0_2 = arith.constant 0 : index
    %c0_3 = arith.constant 0 : index
    %c0_4 = arith.constant 0 : index
    %c0_5 = arith.constant 0 : index
    %2 = vector.load %arg1[%c0_2, %c0_3, %c0_4, %c0_5] : memref<1x3x16x16xf32, #tpu.memory_space<vmem>>, vector<1x1x16x16xf32>
    %3 = vector.shape_cast %2 : vector<1x1x16x16xf32> to vector<1x16x16xf32>
    %c0_6 = arith.constant 0 : index
    %c1 = arith.constant 1 : index
    %c0_7 = arith.constant 0 : index
    %c0_8 = arith.constant 0 : index
    %4 = vector.load %arg1[%c0_6, %c1, %c0_7, %c0_8] : memref<1x3x16x16xf32, #tpu.memory_space<vmem>>, vector<1x1x16x16xf32>
    %5 = vector.shape_cast %4 : vector<1x1x16x16xf32> to vector<1x16x16xf32>
    %6 = arith.addf %3, %5 : vector<1x16x16xf32>
    %c0_9 = arith.constant 0 : index
    %c2 = arith.constant 2 : index
    %c0_10 = arith.constant 0 : index
    %c0_11 = arith.constant 0 : index
    %7 = vector.load %arg1[%c0_9, %c2, %c0_10, %c0_11] : memref<1x3x16x16xf32, #tpu.memory_space<vmem>>, vector<1x1x16x16xf32>
    %8 = vector.shape_cast %7 : vector<1x1x16x16xf32> to vector<1x16x16xf32>
    %9 = arith.addf %6, %8 : vector<1x16x16xf32>
    %c0_12 = arith.constant 0 : index
    %c2_13 = arith.constant 2 : index
    %c2_14 = arith.constant 2 : index
    %10 = vector.load %arg3[%c0_12, %c2_13, %c2_14] : memref<1x20x20xf32, #tpu.memory_space<vmem>>, vector<1x16x16xf32>
    tpu.vector_store %arg3[%c0_12, %c2_13, %c2_14], %9 {strides = array<i32>} : memref<1x20x20xf32, #tpu.memory_space<vmem>>, vector<1x16x16xf32>,
    %cst_15 = arith.constant 0.000000e+00 : f32
    %11 = vector.broadcast %cst_15 : f32 to vector<1x16x16xf32>
    %cst_16 = arith.constant 0.000000e+00 : f32
    %12 = vector.broadcast %cst_16 : f32 to vector<1x16x16xf32>
    %cst_17 = arith.constant 0.000000e+00 : f32
    %13 = vector.broadcast %cst_17 : f32 to vector<1x16x16xf32>
    %c0_18 = arith.constant 0 : index
    %c0_19 = arith.constant 0 : index
    %c0_20 = arith.constant 0 : index
    %14 = vector.load %arg3[%c0_18, %c0_19, %c0_20] : memref<1x20x20xf32, #tpu.memory_space<vmem>>, vector<1x16x16xf32>
    %cst_21 = arith.constant -0.0833333358 : f32
    %15 = vector.broadcast %cst_21 : f32 to vector<1x16x16xf32>
    %16 = arith.mulf %15, %14 : vector<1x16x16xf32>
    %17 = arith.addf %12, %16 : vector<1x16x16xf32>
    %c0_22 = arith.constant 0 : index
    %c0_23 = arith.constant 0 : index
    %c1_24 = arith.constant 1 : index
    %18 = vector.load %arg3[%c0_22, %c0_23, %c1_24] : memref<1x20x20xf32, #tpu.memory_space<vmem>>, vector<1x16x16xf32>
    %cst_25 = arith.constant 0.166666672 : f32
    %19 = vector.broadcast %cst_25 : f32 to vector<1x16x16xf32>
    %20 = arith.mulf %19, %18 : vector<1x16x16xf32>
    %21 = arith.addf %17, %20 : vector<1x16x16xf32>
    %c0_26 = arith.constant 0 : index
    %c0_27 = arith.constant 0 : index
    %c2_28 = arith.constant 2 : index
    %22 = vector.load %arg3[%c0_26, %c0_27, %c2_28] : memref<1x20x20xf32, #tpu.memory_space<vmem>>, vector<1x16x16xf32>
    %cst_29 = arith.constant -0.166666672 : f32
    %23 = vector.broadcast %cst_29 : f32 to vector<1x16x16xf32>
    %24 = arith.mulf %23, %22 : vector<1x16x16xf32>
    %25 = arith.addf %21, %24 : vector<1x16x16xf32>
    %c0_30 = arith.constant 0 : index
    %c0_31 = arith.constant 0 : index
    %c3 = arith.constant 3 : index
    %26 = vector.load %arg3[%c0_30, %c0_31, %c3] : memref<1x20x20xf32, #tpu.memory_space<vmem>>, vector<1x16x16xf32>
    %cst_32 = arith.constant 0.166666672 : f32
    %27 = vector.broadcast %cst_32 : f32 to vector<1x16x16xf32>
    %28 = arith.mulf %27, %26 : vector<1x16x16xf32>
    %29 = arith.addf %25, %28 : vector<1x16x16xf32>
    %c0_33 = arith.constant 0 : index
    %c0_34 = arith.constant 0 : index
    %c4 = arith.constant 4 : index
    %30 = vector.load %arg3[%c0_33, %c0_34, %c4] : memref<1x20x20xf32, #tpu.memory_space<vmem>>, vector<1x16x16xf32>
    %cst_35 = arith.constant -0.0833333358 : f32
    %31 = vector.broadcast %cst_35 : f32 to vector<1x16x16xf32>
    %32 = arith.mulf %31, %30 : vector<1x16x16xf32>
    %33 = arith.addf %29, %32 : vector<1x16x16xf32>
    %c0_36 = arith.constant 0 : index
    %c1_37 = arith.constant 1 : index
    %c0_38 = arith.constant 0 : index
    %34 = vector.load %arg3[%c0_36, %c1_37, %c0_38] : memref<1x20x20xf32, #tpu.memory_space<vmem>>, vector<1x16x16xf32>
    %cst_39 = arith.constant 0.166666672 : f32
    %35 = vector.broadcast %cst_39 : f32 to vector<1x16x16xf32>
    %36 = arith.mulf %35, %34 : vector<1x16x16xf32>
    %37 = arith.addf %33, %36 : vector<1x16x16xf32>
    %c0_40 = arith.constant 0 : index
    %c1_41 = arith.constant 1 : index
    %c1_42 = arith.constant 1 : index
    %38 = vector.load %arg3[%c0_40, %c1_41, %c1_42] : memref<1x20x20xf32, #tpu.memory_space<vmem>>, vector<1x16x16xf32>
    %cst_43 = arith.constant -2.500000e-01 : f32
    %39 = vector.broadcast %cst_43 : f32 to vector<1x16x16xf32>
    %40 = arith.mulf %39, %38 : vector<1x16x16xf32>
    %41 = arith.addf %11, %40 : vector<1x16x16xf32>
    %cst_44 = arith.constant -5.000000e-01 : f32
    %42 = vector.broadcast %cst_44 : f32 to vector<1x16x16xf32>
    %43 = arith.mulf %42, %38 : vector<1x16x16xf32>
    %44 = arith.addf %37, %43 : vector<1x16x16xf32>
    %c0_45 = arith.constant 0 : index
    %c1_46 = arith.constant 1 : index
    %c2_47 = arith.constant 2 : index
    %45 = vector.load %arg3[%c0_45, %c1_46, %c2_47] : memref<1x20x20xf32, #tpu.memory_space<vmem>>, vector<1x16x16xf32>
    %cst_48 = arith.constant 5.000000e-01 : f32
    %46 = vector.broadcast %cst_48 : f32 to vector<1x16x16xf32>
    %47 = arith.mulf %46, %45 : vector<1x16x16xf32>
    %48 = arith.addf %41, %47 : vector<1x16x16xf32>
    %cst_49 = arith.constant 0.666666686 : f32
    %49 = vector.broadcast %cst_49 : f32 to vector<1x16x16xf32>
    %50 = arith.mulf %49, %45 : vector<1x16x16xf32>
    %51 = arith.addf %44, %50 : vector<1x16x16xf32>
    %c0_50 = arith.constant 0 : index
    %c1_51 = arith.constant 1 : index
    %c3_52 = arith.constant 3 : index
    %52 = vector.load %arg3[%c0_50, %c1_51, %c3_52] : memref<1x20x20xf32, #tpu.memory_space<vmem>>, vector<1x16x16xf32>
    %cst_53 = arith.constant -2.500000e-01 : f32
    %53 = vector.broadcast %cst_53 : f32 to vector<1x16x16xf32>
    %54 = arith.mulf %53, %52 : vector<1x16x16xf32>
    %55 = arith.addf %48, %54 : vector<1x16x16xf32>
    %cst_54 = arith.constant -5.000000e-01 : f32
    %56 = vector.broadcast %cst_54 : f32 to vector<1x16x16xf32>
    %57 = arith.mulf %56, %52 : vector<1x16x16xf32>
    %58 = arith.addf %51, %57 : vector<1x16x16xf32>
    %c0_55 = arith.constant 0 : index
    %c1_56 = arith.constant 1 : index
    %c4_57 = arith.constant 4 : index
    %59 = vector.load %arg3[%c0_55, %c1_56, %c4_57] : memref<1x20x20xf32, #tpu.memory_space<vmem>>, vector<1x16x16xf32>
    %cst_58 = arith.constant 0.166666672 : f32
    %60 = vector.broadcast %cst_58 : f32 to vector<1x16x16xf32>
    %61 = arith.mulf %60, %59 : vector<1x16x16xf32>
    %62 = arith.addf %58, %61 : vector<1x16x16xf32>
    %c0_59 = arith.constant 0 : index
    %c2_60 = arith.constant 2 : index
    %c0_61 = arith.constant 0 : index
    %63 = vector.load %arg3[%c0_59, %c2_60, %c0_61] : memref<1x20x20xf32, #tpu.memory_space<vmem>>, vector<1x16x16xf32>
    %cst_62 = arith.constant -0.166666672 : f32
    %64 = vector.broadcast %cst_62 : f32 to vector<1x16x16xf32>
    %65 = arith.mulf %64, %63 : vector<1x16x16xf32>
    %66 = arith.addf %62, %65 : vector<1x16x16xf32>
    %c0_63 = arith.constant 0 : index
    %c2_64 = arith.constant 2 : index
    %c1_65 = arith.constant 1 : index
    %67 = vector.load %arg3[%c0_63, %c2_64, %c1_65] : memref<1x20x20xf32, #tpu.memory_space<vmem>>, vector<1x16x16xf32>
    %cst_66 = arith.constant 5.000000e-01 : f32
    %68 = vector.broadcast %cst_66 : f32 to vector<1x16x16xf32>
    %69 = arith.mulf %68, %67 : vector<1x16x16xf32>
    %70 = arith.addf %55, %69 : vector<1x16x16xf32>
    %cst_67 = arith.constant 0.666666686 : f32
    %71 = vector.broadcast %cst_67 : f32 to vector<1x16x16xf32>
    %72 = arith.mulf %71, %67 : vector<1x16x16xf32>
    %73 = arith.addf %66, %72 : vector<1x16x16xf32>
    %cst_68 = arith.constant 5.000000e-01 : f32
    %74 = vector.broadcast %cst_68 : f32 to vector<1x16x16xf32>
    %75 = arith.mulf %74, %67 : vector<1x16x16xf32>
    %76 = arith.addf %13, %75 : vector<1x16x16xf32>
    %c0_69 = arith.constant 0 : index
    %c2_70 = arith.constant 2 : index
    %c2_71 = arith.constant 2 : index
    %77 = vector.load %arg3[%c0_69, %c2_70, %c2_71] : memref<1x20x20xf32, #tpu.memory_space<vmem>>, vector<1x16x16xf32>
    %cst_72 = arith.constant -1.000000e+00 : f32
    %78 = vector.broadcast %cst_72 : f32 to vector<1x16x16xf32>
    %79 = arith.mulf %78, %77 : vector<1x16x16xf32>
    %80 = arith.addf %70, %79 : vector<1x16x16xf32>
    %cst_73 = arith.constant -1.000000e+00 : f32
    %81 = vector.broadcast %cst_73 : f32 to vector<1x16x16xf32>
    %82 = arith.mulf %81, %77 : vector<1x16x16xf32>
    %83 = arith.addf %73, %82 : vector<1x16x16xf32>
    %cst_74 = arith.constant -1.000000e+00 : f32
    %84 = vector.broadcast %cst_74 : f32 to vector<1x16x16xf32>
    %85 = arith.mulf %84, %77 : vector<1x16x16xf32>
    %86 = arith.addf %76, %85 : vector<1x16x16xf32>
    %c0_75 = arith.constant 0 : index
    %c2_76 = arith.constant 2 : index
    %c3_77 = arith.constant 3 : index
    %87 = vector.load %arg3[%c0_75, %c2_76, %c3_77] : memref<1x20x20xf32, #tpu.memory_space<vmem>>, vector<1x16x16xf32>
    %cst_78 = arith.constant 5.000000e-01 : f32
    %88 = vector.broadcast %cst_78 : f32 to vector<1x16x16xf32>
    %89 = arith.mulf %88, %87 : vector<1x16x16xf32>
    %90 = arith.addf %80, %89 : vector<1x16x16xf32>
    %cst_79 = arith.constant 0.666666686 : f32
    %91 = vector.broadcast %cst_79 : f32 to vector<1x16x16xf32>
    %92 = arith.mulf %91, %87 : vector<1x16x16xf32>
    %93 = arith.addf %83, %92 : vector<1x16x16xf32>
    %cst_80 = arith.constant 5.000000e-01 : f32
    %94 = vector.broadcast %cst_80 : f32 to vector<1x16x16xf32>
    %95 = arith.mulf %94, %87 : vector<1x16x16xf32>
    %96 = arith.addf %86, %95 : vector<1x16x16xf32>
    %c0_81 = arith.constant 0 : index
    %c2_82 = arith.constant 2 : index
    %c4_83 = arith.constant 4 : index
    %97 = vector.load %arg3[%c0_81, %c2_82, %c4_83] : memref<1x20x20xf32, #tpu.memory_space<vmem>>, vector<1x16x16xf32>
    %cst_84 = arith.constant -0.166666672 : f32
    %98 = vector.broadcast %cst_84 : f32 to vector<1x16x16xf32>
    %99 = arith.mulf %98, %97 : vector<1x16x16xf32>
    %100 = arith.addf %93, %99 : vector<1x16x16xf32>
    %c0_85 = arith.constant 0 : index
    %c3_86 = arith.constant 3 : index
    %c0_87 = arith.constant 0 : index
    %101 = vector.load %arg3[%c0_85, %c3_86, %c0_87] : memref<1x20x20xf32, #tpu.memory_space<vmem>>, vector<1x16x16xf32>
    %cst_88 = arith.constant 0.166666672 : f32
    %102 = vector.broadcast %cst_88 : f32 to vector<1x16x16xf32>
    %103 = arith.mulf %102, %101 : vector<1x16x16xf32>
    %104 = arith.addf %100, %103 : vector<1x16x16xf32>
    %c0_89 = arith.constant 0 : index
    %c3_90 = arith.constant 3 : index
    %c1_91 = arith.constant 1 : index
    %105 = vector.load %arg3[%c0_89, %c3_90, %c1_91] : memref<1x20x20xf32, #tpu.memory_space<vmem>>, vector<1x16x16xf32>
    %cst_92 = arith.constant -2.500000e-01 : f32
    %106 = vector.broadcast %cst_92 : f32 to vector<1x16x16xf32>
    %107 = arith.mulf %106, %105 : vector<1x16x16xf32>
    %108 = arith.addf %90, %107 : vector<1x16x16xf32>
    %cst_93 = arith.constant -5.000000e-01 : f32
    %109 = vector.broadcast %cst_93 : f32 to vector<1x16x16xf32>
    %110 = arith.mulf %109, %105 : vector<1x16x16xf32>
    %111 = arith.addf %104, %110 : vector<1x16x16xf32>
    %c0_94 = arith.constant 0 : index
    %c3_95 = arith.constant 3 : index
    %c2_96 = arith.constant 2 : index
    %112 = vector.load %arg3[%c0_94, %c3_95, %c2_96] : memref<1x20x20xf32, #tpu.memory_space<vmem>>, vector<1x16x16xf32>
    %cst_97 = arith.constant 5.000000e-01 : f32
    %113 = vector.broadcast %cst_97 : f32 to vector<1x16x16xf32>
    %114 = arith.mulf %113, %112 : vector<1x16x16xf32>
    %115 = arith.addf %108, %114 : vector<1x16x16xf32>
    %cst_98 = arith.constant 0.666666686 : f32
    %116 = vector.broadcast %cst_98 : f32 to vector<1x16x16xf32>
    %117 = arith.mulf %116, %112 : vector<1x16x16xf32>
    %118 = arith.addf %111, %117 : vector<1x16x16xf32>
    %c0_99 = arith.constant 0 : index
    %c3_100 = arith.constant 3 : index
    %c3_101 = arith.constant 3 : index
    %119 = vector.load %arg3[%c0_99, %c3_100, %c3_101] : memref<1x20x20xf32, #tpu.memory_space<vmem>>, vector<1x16x16xf32>
    %cst_102 = arith.constant -2.500000e-01 : f32
    %120 = vector.broadcast %cst_102 : f32 to vector<1x16x16xf32>
    %121 = arith.mulf %120, %119 : vector<1x16x16xf32>
    %122 = arith.addf %115, %121 : vector<1x16x16xf32>
    %cst_103 = arith.constant -5.000000e-01 : f32
    %123 = vector.broadcast %cst_103 : f32 to vector<1x16x16xf32>
    %124 = arith.mulf %123, %119 : vector<1x16x16xf32>
    %125 = arith.addf %118, %124 : vector<1x16x16xf32>
    %c0_104 = arith.constant 0 : index
    %c3_105 = arith.constant 3 : index
    %c4_106 = arith.constant 4 : index
    %126 = vector.load %arg3[%c0_104, %c3_105, %c4_106] : memref<1x20x20xf32, #tpu.memory_space<vmem>>, vector<1x16x16xf32>
    %cst_107 = arith.constant 0.166666672 : f32
    %127 = vector.broadcast %cst_107 : f32 to vector<1x16x16xf32>
    %128 = arith.mulf %127, %126 : vector<1x16x16xf32>
    %129 = arith.addf %125, %128 : vector<1x16x16xf32>
    %c0_108 = arith.constant 0 : index
    %c4_109 = arith.constant 4 : index
    %c0_110 = arith.constant 0 : index
    %130 = vector.load %arg3[%c0_108, %c4_109, %c0_110] : memref<1x20x20xf32, #tpu.memory_space<vmem>>, vector<1x16x16xf32>
    %cst_111 = arith.constant -0.0833333358 : f32
    %131 = vector.broadcast %cst_111 : f32 to vector<1x16x16xf32>
    %132 = arith.mulf %131, %130 : vector<1x16x16xf32>
    %133 = arith.addf %129, %132 : vector<1x16x16xf32>
    %c0_112 = arith.constant 0 : index
    %c4_113 = arith.constant 4 : index
    %c1_114 = arith.constant 1 : index
    %134 = vector.load %arg3[%c0_112, %c4_113, %c1_114] : memref<1x20x20xf32, #tpu.memory_space<vmem>>, vector<1x16x16xf32>
    %cst_115 = arith.constant 0.166666672 : f32
    %135 = vector.broadcast %cst_115 : f32 to vector<1x16x16xf32>
    %136 = arith.mulf %135, %134 : vector<1x16x16xf32>
    %137 = arith.addf %133, %136 : vector<1x16x16xf32>
    %c0_116 = arith.constant 0 : index
    %c4_117 = arith.constant 4 : index
    %c2_118 = arith.constant 2 : index
    %138 = vector.load %arg3[%c0_116, %c4_117, %c2_118] : memref<1x20x20xf32, #tpu.memory_space<vmem>>, vector<1x16x16xf32>
    %cst_119 = arith.constant -0.166666672 : f32
    %139 = vector.broadcast %cst_119 : f32 to vector<1x16x16xf32>
    %140 = arith.mulf %139, %138 : vector<1x16x16xf32>
    %141 = arith.addf %137, %140 : vector<1x16x16xf32>
    %c0_120 = arith.constant 0 : index
    %c4_121 = arith.constant 4 : index
    %c3_122 = arith.constant 3 : index
    %142 = vector.load %arg3[%c0_120, %c4_121, %c3_122] : memref<1x20x20xf32, #tpu.memory_space<vmem>>, vector<1x16x16xf32>
    %cst_123 = arith.constant 0.166666672 : f32
    %143 = vector.broadcast %cst_123 : f32 to vector<1x16x16xf32>
    %144 = arith.mulf %143, %142 : vector<1x16x16xf32>
    %145 = arith.addf %141, %144 : vector<1x16x16xf32>
    %c0_124 = arith.constant 0 : index
    %c4_125 = arith.constant 4 : index
    %c4_126 = arith.constant 4 : index
    %146 = vector.load %arg3[%c0_124, %c4_125, %c4_126] : memref<1x20x20xf32, #tpu.memory_space<vmem>>, vector<1x16x16xf32>
    %cst_127 = arith.constant -0.0833333358 : f32
    %147 = vector.broadcast %cst_127 : f32 to vector<1x16x16xf32>
    %148 = arith.mulf %147, %146 : vector<1x16x16xf32>
    %149 = arith.addf %145, %148 : vector<1x16x16xf32>
    %cst_128 = arith.constant -3.000000e+00 : f32
    %cst_129 = arith.constant 3.000000e+00 : f32
    %150 = vector.broadcast %cst_128 : f32 to vector<1x16x16xf32>
    %151 = arith.maximumf %150, %122 : vector<1x16x16xf32>
    %152 = vector.broadcast %cst_129 : f32 to vector<1x16x16xf32>
    %153 = arith.minimumf %152, %151 : vector<1x16x16xf32>
    %c0_130 = arith.constant 0 : index
    %c0_131 = arith.constant 0 : index
    %c0_132 = arith.constant 0 : index
    %c0_133 = arith.constant 0 : index
    %154 = vector.load %arg2[%c0_130, %c0_131, %c0_132, %c0_133] : memref<1x3x16x16xf32, #tpu.memory_space<vmem>>, vector<1x1x16x16xf32>
    %155 = vector.shape_cast %154 : vector<1x1x16x16xf32> to vector<1x16x16xf32>
    %156 = vector.shape_cast %153 : vector<1x16x16xf32> to vector<1x1x16x16xf32>
    tpu.vector_store %arg2[%c0_130, %c0_131, %c0_132, %c0_133], %156 {strides = array<i32>} : memref<1x3x16x16xf32, #tpu.memory_space<vmem>>, vector<1x1x16x16xf32>,
    %cst_134 = arith.constant -3.000000e+00 : f32
    %cst_135 = arith.constant 3.000000e+00 : f32
    %157 = vector.broadcast %cst_134 : f32 to vector<1x16x16xf32>
    %158 = arith.maximumf %157, %149 : vector<1x16x16xf32>
    %159 = vector.broadcast %cst_135 : f32 to vector<1x16x16xf32>
    %160 = arith.minimumf %159, %158 : vector<1x16x16xf32>
    %c0_136 = arith.constant 0 : index
    %c1_137 = arith.constant 1 : index
    %c0_138 = arith.constant 0 : index
    %c0_139 = arith.constant 0 : index
    %161 = vector.load %arg2[%c0_136, %c1_137, %c0_138, %c0_139] : memref<1x3x16x16xf32, #tpu.memory_space<vmem>>, vector<1x1x16x16xf32>
    %162 = vector.shape_cast %161 : vector<1x1x16x16xf32> to vector<1x16x16xf32>
    %163 = vector.shape_cast %160 : vector<1x16x16xf32> to vector<1x1x16x16xf32>
    tpu.vector_store %arg2[%c0_136, %c1_137, %c0_138, %c0_139], %163 {strides = array<i32>} : memref<1x3x16x16xf32, #tpu.memory_space<vmem>>, vector<1x1x16x16xf32>,
    %cst_140 = arith.constant -3.000000e+00 : f32
    %cst_141 = arith.constant 3.000000e+00 : f32
    %164 = vector.broadcast %cst_140 : f32 to vector<1x16x16xf32>
    %165 = arith.maximumf %164, %96 : vector<1x16x16xf32>
    %166 = vector.broadcast %cst_141 : f32 to vector<1x16x16xf32>
    %167 = arith.minimumf %166, %165 : vector<1x16x16xf32>
    %c0_142 = arith.constant 0 : index
    %c2_143 = arith.constant 2 : index
    %c0_144 = arith.constant 0 : index
    %c0_145 = arith.constant 0 : index
    %168 = vector.load %arg2[%c0_142, %c2_143, %c0_144, %c0_145] : memref<1x3x16x16xf32, #tpu.memory_space<vmem>>, vector<1x1x16x16xf32>
    %169 = vector.shape_cast %168 : vector<1x1x16x16xf32> to vector<1x16x16xf32>
    %170 = vector.shape_cast %167 : vector<1x16x16xf32> to vector<1x1x16x16xf32>
    tpu.vector_store %arg2[%c0_142, %c2_143, %c0_144, %c0_145], %170 {strides = array<i32>} : memref<1x3x16x16xf32, #tpu.memory_space<vmem>>, vector<1x1x16x16xf32>,
    return
  }
  func.func @transform_0(%arg0: i32) -> (i32, i32, i32, i32) {
    %c0_i32 = arith.constant 0 : i32
    %c0_i32_0 = arith.constant 0 : i32
    %c0_i32_1 = arith.constant 0 : i32
    %c0_i32_2 = arith.constant 0 : i32
    return %arg0, %c0_i32, %c0_i32_0, %c0_i32_1 : i32, i32, i32, i32
  }
  func.func @transform_1(%arg0: i32) -> (i32, i32, i32, i32) {
    %c0_i32 = arith.constant 0 : i32
    %c0_i32_0 = arith.constant 0 : i32
    %c0_i32_1 = arith.constant 0 : i32
    %c0_i32_2 = arith.constant 0 : i32
    return %arg0, %c0_i32, %c0_i32_0, %c0_i32_1 : i32, i32, i32, i32
  }
}

</mosaic_0001>

<bundles_post_ra>
// kernel: tpu_custom_call.1
= control target key start
LH: loop header
LB: loop body
LE: loop exit
PB: predicated region body
PF: predicated region fallthrough
CT: control target
= control target key end

     0   :  { %6 = vsyncpa [#allocation4], 0  ;;  %s1117_s0 = inlined_call_operand.hbm [shape: f32[2,3,16,16], index: 0, kind: input, shape index: {}]   ;;  %s1118_s1 = inlined_call_operand.hbm [shape: f32[2,3,16,16], index: 1, kind: output, shape index: {}]  }
   0x1   :  { %8 = vsyncpa [#allocation4 + $0x1], 0 }
   0x2   :  { %9 = vsyncpa [#allocation5], 0 }
   0x3   :  { %11 = vsyncpa [#allocation5 + $0x1], 0  ;;  %s809_s6 = smov 0   ;;  %s811_s7 = smov 0  }
   0x4   :  { %s813_s8 = smov 0   ;;  %s815_s9 = smov 0  }
   0x5 LB: > { %s830_s10 = sadd.s32 4294967295, %s785_s9   ;;  %s607_s11 = sadd.s32 4294967294, %s785_s9   ;;  %s785_s9 = sphi %s815_s9, %s1130_s9   ;;  %s781_s8 = sphi %s813_s8, %s1129_s8   ;;  %s777_s7 = sphi %s811_s7, %s1128_s7   ;;  %s773_s6 = sphi %s809_s6, %s1127_s6  }
   0x6   : > { %s834_s12 = sadd.s32 1, %s785_s9   ;;  %s24_s13 = sadd.s32 1, %s781_s8 }
   0x7   : > { %s21_s14 = ssub.s32 %s785_s9, %s834_s12  ;;  %p31_p0 = scmp.ne.s32.totalorder %s781_s8, %s777_s7 }
   0x8   : > { %p22_p1 = scmp.eq.s32.totalorder %s21_s14, 0  ;;  %p32_p2 = scmp.eq.s32.totalorder %s785_s9, 0 }
   0x9   : > { %p37_p3 = scmp.ne.s32.totalorder %s777_s7, %s773_s6  ;;  %p38_p4 = scmp.eq.s32.totalorder %s830_s10, 0 }
   0xa   : > { %s846_s15 = scalar_select %p22_p1, %s781_s8, %s24_s13  }
   0xb   : > { %p33_p5 = por %p32_p2, %p31_p0  ;;  %p848_p6 = por %p38_p4, %p37_p3 }
   0xc   : > { %p61_p7 = scmp.eq.s32.totalorder %s830_s10, 1  ;;  %p67_p8 = scmp.eq.s32.totalorder %s607_s11, 1 }
   0xd   : > { %p645_p10 = scmp.lt.s32.totalorder %s785_s9, 2  ;;  %s87_s19 = sand.u32 1, %s781_s8  }
   0xe   : > { %p855_p11 = por %p61_p7, %p31_p0  ;;  %p859_p12 = por %p67_p8, %p37_p3 }
   0xf   : > { %s630_s20 = smul.u32 768, %s785_s9  ;;  %p870_p13 = pnand %p645_p10, %p33_p5 }
  0x10   : > { %s1121_s17 = scalar_select %p855_p11, 1, 0 }
  0x11   : > { %s1122_s18 = scalar_select %p859_p12, 1, 0 }
  0x12   : > { %s629_s21 = smul.u32 48, %s87_s19  ;;  %s868_s24 = scalar_lea.hbm %s1117_s0, %s630_s20 }
  0x13   : > { %s876_s28 = scalar_lea.sflag [#allocation4], %s87_s19  ;;  %s689_s29 = scalar_lea.hbm %s868_s24, 768 }
  0x14   : > { %s91_s26 = scalar_lea.vmem [#allocation3], %s629_s21  ;;  %p690_p0 = scmp.ne.s32.totalorder %s868_s24, %s689_s29 }
  0x15   : > { %s98_s27 = sshll.u32 %s91_s26, 4  ;;  %p691_p1 = pneg %p870_p13  ;;  %s874_s27 = int_to_ptr.vmem [resolvable:$true] %s98_s27 }
  0x16   : > { %s694_s3 = scalar_lea.hbm %s1117_s0, 1536  ;;  %p695_p4 = scmp.lt.u32.totalorder %s868_s24, %s1117_s0 }
  0x17   : > { %p692_p2 = pnand %p691_p1, %p690_p0  ;;  %p696_p5 = scmp.lt.u32.totalorder %s694_s3, %s689_s29 }
  0x18   : > { %p698_p8 = scmp.lt.u32.totalorder %s689_s29, %s868_s24 }
  0x19   : > { %p693_p3 = pneg %p692_p2  ;;  %p697_p7 = por %p696_p5, %p695_p4 }
  0x1b   : > { %p699_p10 = por %p698_p8, %p697_p7 }
  0x1d   : > { %p700_p9 = pnand %p699_p10, %p693_p3 }
  0x1f   : > { %703 = shalt.err (!%p700_p9)
}
  0x20   : > { %s704_s11 = scalar_lea.vmem %s874_s27, 768  ;;  %s787_s13 = smov [#allocation3]  }
  0x21   : > { %p705_p0 = scmp.ne.s32.totalorder %s874_s27, %s704_s11  ;;  %s709_s14 = sshll.u32 %s787_s13, 4  ;;  %s710_s14 = int_to_ptr.vmem [resolvable:$false] %s709_s14 }
  0x22   : > { %s711_s19 = scalar_lea.vmem %s710_s14, 1536  ;;  %p712_p11 = scmp.lt.s32.totalorder %s874_s27, %s710_s14 }
  0x23   : > { %p707_p2 = pnand %p705_p0, %p691_p1  ;;  %p713_p4 = scmp.lt.s32.totalorder %s711_s19, %s704_s11 }
  0x25   : > { %p708_p12 = pneg %p707_p2  ;;  %p714_p5 = por %p713_p4, %p712_p11 }
  0x27   : > { %p715_p7 = pnand %p714_p5, %p708_p12 }
  0x29   : > { %718 = shalt.err (!%p715_p7)
}
  0x2a   : > { %s788_s20 = smov 128   ;;  %s789_s21 = smov 8  }
  0x2b   : > { %640 = dma.hbm_to_vmem [thread:$0]  (!%p870_p13), %s868_s24, 768, %s874_s27, %s876_s28, %s788_s20, %s788_s20, %s789_s21  }
  0x2c   : > { %p611_p9 = scmp.ge.s32.totalorder %s785_s9, 1  ;;  %p106_p1 = scmp.lt.s32.totalorder %s785_s9, 3 }
  0x2e   : > { %p107_p3 = pnand %p611_p9, %p106_p1 }
  0x2f   : > { %s907_s22 = sand.u32 (!%p107_p3), 1, %s777_s7  }
  0x30   : > { %110 = sbr.rel (%p107_p3) target bundleno = 463 (0x1cf), region = 24  ;;  %s113_s26 = scalar_lea.sflag (!%p107_p3), [#allocation4], %s907_s22 }
  0x31   : > { %s631_s23 = smul.u32 (!%p107_p3), 48, %s907_s22 }
  0x33   : > { %s116_s29 = scalar_lea.vmem (!%p107_p3), [#allocation3], %s631_s23 }
  0x37   : > { %764 = dma.done.wait (%p848_p6), %s113_s26, 768  }
  0x38   : > { %766 = vsyncadd (%p848_p6), %s113_s26, 4294966528  ;;  %vm135_vm0 = vcmask 162816   ;;  %vm138_vm1 = vcmask 158720   ;;  %v790_v0 = vmov 0.0   ;;  %v140_v1 = vld [vmem:[%s116_s29] sm:$0xff]  ;;  %v612_v2 = vld [vmem:[%s116_s29 + $0x10] sm:$0xff] }
  0x39   : > { %136 = vst.msk [vmem:[#allocation2] sm:$0xff] %vm135_vm0, %v790_v0  ;;  %137 = vst.msk [vmem:[#allocation2 + $0x8] sm:$0xff] %vm135_vm0, %v790_v0  ;;  %v614_v3 = vld [vmem:[%s116_s29 + $0x20] sm:$0xff]  ;;  %v145_v4 = vadd.f32 %v612_v2, %v140_v1  ;;  %v141_v5 = vld [vmem:[%s116_s29 + $0x8] sm:$0xff]  ;;  %s791_s24 = smov 2   ;;  %vm160_vm2 = vcmask 146448  }
  0x3a   : > { %139 = vst.msk [vmem:[#allocation2 + $0x10] sm:$0xf] %vm138_vm1, %v790_v0  ;;  %v613_v6 = vld [vmem:[%s116_s29 + $0x18] sm:$0xff]  ;;  %v615_v8 = vld [vmem:[%s116_s29 + $0x28] sm:$0xff]  ;;  %s792_s16 = smov 127   ;;  %s793_s25 = smov 126  }
  0x3b   : > { %v146_v7 = vadd.f32 %v613_v6, %v141_v5  ;;  %v150_v9 = vadd.f32 %v614_v3, %v145_v4  ;;  %s794_s27 = smov 125   ;;  %s795_s28 = smov 124   ;;  %vm495_vm3 = vcmask 130048  }
  0x3c   : > { %s134_s30 = scalar_lea.vmem [#allocation6], %s631_s23  ;;  %s632_s3 = smul.u32 768, %s830_s10 }
  0x3d   : > { %154 = vrot.lane.b32.xlu0 %v150_v9, %s791_s24  ;;  %v151_v10 = vadd.f32 %v615_v8, %v146_v7  ;;  %s534_s2 = sshll.u32 %s134_s30, 4  ;;  %s521_s13 = scalar_lea.sflag [#allocation5], %s907_s22  ;;  %s1066_s2 = int_to_ptr.vmem [resolvable:$true] %s534_s2 }
  0x3e   : > { %s1072_s11 = scalar_lea.hbm %s1118_s1, %s632_s3  ;;  %s719_s14 = scalar_lea.vmem %s1066_s2, 768 }
  0x3f   : > { %p720_p6 = scmp.ne.s32.totalorder %s1066_s2, %s719_s14  ;;  %p1124_p11 = scmp.ne.s32.totalorder %s1121_s17, 0 }
  0x40   : > { %s796_s10 = smov [#allocation6]  }
  0x41   : > { %156 = vrot.lane.b32.xlu0 %v151_v10, %s791_s24  ;;  %p721_p12 = pnand %p720_p6, %p1124_p11  ;;  %s723_s19 = sshll.u32 %s796_s10, 4  ;;  %s724_s19 = int_to_ptr.vmem [resolvable:$false] %s723_s19 }
  0x42   : > { %s725_s20 = scalar_lea.vmem %s724_s19, 1536  ;;  %p726_p8 = scmp.lt.s32.totalorder %s1066_s2, %s724_s19 }
  0x43   : > { %p722_p13 = pneg %p721_p12  ;;  %p727_p10 = scmp.lt.s32.totalorder %s725_s20, %s719_s14 }
  0x45   : > { %p728_p0 = por %p727_p10, %p726_p8 }
  0x47   : > { %p729_p2 = pnand %p728_p0, %p722_p13 }
  0xaf   : > { %v155_v11 = vpop.permute.xlu0 %154 }
  0xb0   : > { %161 = vst.msk [vmem:[#allocation2 + $0x2] sm:$0xff] %vm160_vm2, %v155_v11 }
  0xb3   : > { %v157_v12 = vpop.permute.xlu0 %156 }
  0xb4   : > { %162 = vst.msk [vmem:[#allocation2 + $0xa] sm:$0xff] %vm160_vm2, %v157_v12 }
  0xb7   : > { %v211_v13 = vld [vmem:[#allocation2 + $0x1] sm:$0xff] }
  0xb8   : > { %v233_v14 = vmul.f32 0.5, %v211_v13  ;;  %v917_v15 = vmul.f32 -0.25, %v211_v13  ;;  %v919_v16 = vld [vmem:[#allocation2 + $0x2] sm:$0xff]  ;;  %v221_v38 = vmul.f32 -0.5, %v211_v13  ;;  %v245_v40 = vmul.f32 0.6666667, %v211_v13 }
  0xb9   : > { %v309_v19 = vmul.f32 -1.0, %v919_v16  ;;  %v930_v21 = vmul.f32 0.5, %v919_v16  ;;  %v163_v29 = vld [vmem:[#allocation2] sm:$0xff]  ;;  %v977_v43 = vmul.f32 0.16666667, %v211_v13 }
  0xba   : > { %237 = vrot.lane.b32.xlu1 %v233_v14, %s792_s16  ;;  %259 = vrot.lane.b32.xlu0 %v917_v15, %s793_s25  ;;  %v169_v31 = vmul.f32 0.16666667, %v163_v29  ;;  %v181_v33 = vmul.f32 -0.16666667, %v163_v29  ;;  %v963_v37 = vmul.f32 -0.083333336, %v163_v29 }
  0xbb   : > { %v212_v17 = vld [vmem:[#allocation2 + $0x9] sm:$0xff]  ;;  %v295_v44 = vmul.f32 0.6666667, %v919_v16  ;;  %v993_v47 = vmul.f32 -0.16666667, %v919_v16 }
  0xbc   : > { %v234_v18 = vmul.f32 0.5, %v212_v17  ;;  %v927_v20 = vmul.f32 -0.25, %v212_v17  ;;  %v286_v22 = vld [vmem:[#allocation2 + $0xa] sm:$0xff]  ;;  %v222_v41 = vmul.f32 -0.5, %v212_v17  ;;  %v246_v42 = vmul.f32 0.6666667, %v212_v17 }
  0xbd   : > { %v932_v23 = vld [vmem:[#allocation2 + $0x3] sm:$0xff]  ;;  %v310_v24 = vmul.f32 -1.0, %v286_v22  ;;  %v941_v26 = vmul.f32 0.5, %v286_v22  ;;  %v946_v28 = vld [vmem:[#allocation2 + $0xb] sm:$0xff]  ;;  %v985_v45 = vmul.f32 0.16666667, %v212_v17 }
  0xbe   : > { %239 = vrot.lane.b32.xlu1 %v234_v18, %s792_s16  ;;  %313 = vrot.lane.b32.xlu0 %v309_v19, %s792_s16  ;;  %v383_v25 = vmul.f32 0.5, %v932_v23  ;;  %v944_v27 = vmul.f32 -0.25, %v932_v23  ;;  %v384_v30 = vmul.f32 0.5, %v946_v28  ;;  %v956_v32 = vmul.f32 -0.25, %v946_v28  ;;  %v164_v34 = vld [vmem:[#allocation2 + $0x8] sm:$0xff] }
  0xbf   : > { %v170_v35 = vmul.f32 0.16666667, %v164_v34  ;;  %v182_v36 = vmul.f32 -0.16666667, %v164_v34  ;;  %v970_v39 = vmul.f32 -0.083333336, %v164_v34 }
  0xc0   : > { %v296_v46 = vmul.f32 0.6666667, %v286_v22  ;;  %v371_v48 = vmul.f32 -0.5, %v932_v23  ;;  %v1001_v49 = vmul.f32 -0.16666667, %v286_v22  ;;  %v372_v51 = vmul.f32 -0.5, %v946_v28 }
  0xc1   : > { %v395_v50 = vmul.f32 0.6666667, %v932_v23  ;;  %v396_v52 = vmul.f32 0.6666667, %v946_v28  ;;  %v1012_v53 = vmul.f32 0.16666667, %v932_v23 }
  0xc2   : > { %261 = vrot.lane.b32.xlu1 %v927_v20, %s793_s25  ;;  %333 = vrot.lane.b32.xlu0 %v930_v21, %s793_s25  ;;  %v435_v54 = vld [vmem:[#allocation2 + $0x4] sm:$0xff]  ;;  %v1020_v56 = vmul.f32 0.16666667, %v946_v28  ;;  %v436_v58 = vld [vmem:[#allocation2 + $0xc] sm:$0xff] }
  0xc3   : > { %v441_v55 = vmul.f32 0.16666667, %v435_v54  ;;  %v453_v57 = vmul.f32 -0.16666667, %v435_v54  ;;  %v442_v59 = vmul.f32 0.16666667, %v436_v58 }
  0xc4   : > { %v454_v60 = vmul.f32 -0.16666667, %v436_v58  ;;  %v1027_v61 = vmul.f32 -0.083333336, %v435_v54  ;;  %v1033_v62 = vmul.f32 -0.083333336, %v436_v58 }
  0xc6   : > { %315 = vrot.lane.b32.xlu1 %v310_v24, %s792_s16  ;;  %387 = vrot.lane.b32.xlu0 %v383_v25, %s792_s16 }
  0xca   : > { %335 = vrot.lane.b32.xlu1 %v941_v26, %s793_s25  ;;  %409 = vrot.lane.b32.xlu0 %v944_v27, %s793_s25 }
  0xce   : > { %389 = vrot.lane.b32.xlu1 %v384_v30, %s792_s16  ;;  %173 = vrot.lane.b32.xlu0 %v169_v31, %s792_s16 }
  0xd2   : > { %411 = vrot.lane.b32.xlu1 %v956_v32, %s793_s25  ;;  %185 = vrot.lane.b32.xlu0 %v181_v33, %s793_s25 }
  0xd6   : > { %175 = vrot.lane.b32.xlu1 %v170_v35, %s792_s16  ;;  %193 = vrot.lane.b32.xlu0 %v169_v31, %s794_s27 }
  0xda   : > { %187 = vrot.lane.b32.xlu1 %v182_v36, %s793_s25  ;;  %203 = vrot.lane.b32.xlu0 %v963_v37, %s795_s28 }
  0xde   : > { %195 = vrot.lane.b32.xlu1 %v170_v35, %s794_s27  ;;  %225 = vrot.lane.b32.xlu0 %v221_v38, %s792_s16 }
  0xe2   : > { %205 = vrot.lane.b32.xlu1 %v970_v39, %s795_s28  ;;  %249 = vrot.lane.b32.xlu0 %v245_v40, %s793_s25 }
  0xe6   : > { %227 = vrot.lane.b32.xlu1 %v222_v41, %s792_s16  ;;  %267 = vrot.lane.b32.xlu0 %v221_v38, %s794_s27 }
  0xea   : > { %251 = vrot.lane.b32.xlu1 %v246_v42, %s793_s25  ;;  %277 = vrot.lane.b32.xlu0 %v977_v43, %s795_s28 }
  0xee   : > { %269 = vrot.lane.b32.xlu1 %v222_v41, %s794_s27  ;;  %299 = vrot.lane.b32.xlu0 %v295_v44, %s792_s16 }
  0xf2   : > { %279 = vrot.lane.b32.xlu1 %v985_v45, %s795_s28  ;;  %321 = vrot.lane.b32.xlu0 %v309_v19, %s793_s25 }
  0xf6   : > { %301 = vrot.lane.b32.xlu1 %v296_v46, %s792_s16  ;;  %341 = vrot.lane.b32.xlu0 %v295_v44, %s794_s27 }
  0xfa   : > { %323 = vrot.lane.b32.xlu1 %v310_v24, %s793_s25  ;;  %353 = vrot.lane.b32.xlu0 %v993_v47, %s795_s28 }
  0xfe   : > { %343 = vrot.lane.b32.xlu1 %v296_v46, %s794_s27  ;;  %375 = vrot.lane.b32.xlu0 %v371_v48, %s792_s16 }
 0x102   : > { %355 = vrot.lane.b32.xlu1 %v1001_v49, %s795_s28  ;;  %399 = vrot.lane.b32.xlu0 %v395_v50, %s793_s25 }
 0x106   : > { %377 = vrot.lane.b32.xlu1 %v372_v51, %s792_s16  ;;  %417 = vrot.lane.b32.xlu0 %v371_v48, %s794_s27 }
 0x10a   : > { %401 = vrot.lane.b32.xlu1 %v396_v52, %s793_s25  ;;  %427 = vrot.lane.b32.xlu0 %v1012_v53, %s795_s28 }
 0x10e   : > { %419 = vrot.lane.b32.xlu1 %v372_v51, %s794_s27  ;;  %445 = vrot.lane.b32.xlu0 %v441_v55, %s792_s16 }
 0x112   : > { %429 = vrot.lane.b32.xlu1 %v1020_v56, %s795_s28  ;;  %457 = vrot.lane.b32.xlu0 %v453_v57, %s793_s25 }
 0x116   : > { %447 = vrot.lane.b32.xlu1 %v442_v59, %s792_s16  ;;  %465 = vrot.lane.b32.xlu0 %v441_v55, %s794_s27 }
 0x11a   : > { %459 = vrot.lane.b32.xlu1 %v454_v60, %s793_s25  ;;  %475 = vrot.lane.b32.xlu0 %v1027_v61, %s795_s28 }
 0x11e   : > { %467 = vrot.lane.b32.xlu1 %v442_v59, %s794_s27 }
 0x122   : > { %477 = vrot.lane.b32.xlu1 %v1033_v62, %s795_s28 }
 0x12c   : > { %v238_v63 = vpop.permute.xlu1 %237  ;;  %v260_v0 = vpop.permute.xlu0 %259 }
 0x12d   : > { %v243_v1 = vadd.f32 %v238_v63, %v917_v15 }
 0x12f   : > { %v265_v2 = vadd.f32 %v260_v0, %v243_v1 }
 0x130   : > { %v240_v3 = vpop.permute.xlu1 %239  ;;  %v314_v4 = vpop.permute.xlu0 %313 }
 0x131   : > { %v293_v5 = vadd.f32 %v930_v21, %v265_v2  ;;  %v244_v6 = vadd.f32 %v240_v3, %v927_v20  ;;  %v329_v22 = vadd.f32 %v314_v4, %v930_v21 }
 0x133   : > { %v319_v7 = vadd.f32 %v314_v4, %v293_v5 }
 0x134   : > { %v262_v8 = vpop.permute.xlu1 %261  ;;  %v334_v9 = vpop.permute.xlu0 %333 }
 0x135   : > { %v266_v10 = vadd.f32 %v262_v8, %v244_v6  ;;  %v339_v11 = vadd.f32 %v334_v9, %v319_v7  ;;  %v349_v20 = vadd.f32 %v334_v9, %v329_v22 }
 0x137   : > { %v294_v12 = vadd.f32 %v941_v26, %v266_v10  ;;  %v369_v13 = vadd.f32 %v944_v27, %v339_v11  ;;  %v622_v31 = vclamps-f32 %v349_v20, 3.0 }
 0x138   : > { %v316_v14 = vpop.permute.xlu1 %315  ;;  %v388_v16 = vpop.permute.xlu0 %387 }
 0x139   : > { %v320_v17 = vadd.f32 %v316_v14, %v294_v12  ;;  %v393_v15 = vadd.f32 %v388_v16, %v369_v13  ;;  %v330_v35 = vadd.f32 %v316_v14, %v941_v26 }
 0x13c   : > { %v336_v18 = vpop.permute.xlu1 %335  ;;  %v410_v19 = vpop.permute.xlu0 %409 }
 0x13d   : > { %v340_v23 = vadd.f32 %v336_v18, %v320_v17  ;;  %v415_v24 = vadd.f32 %v410_v19, %v393_v15  ;;  %v350_v21 = vadd.f32 %v336_v18, %v330_v35 }
 0x13f   : > { %v616_v25 = vclamps-f32 %v415_v24, 3.0  ;;  %v370_v28 = vadd.f32 %v956_v32, %v340_v23  ;;  %v623_v32 = vclamps-f32 %v350_v21, 3.0 }
 0x140   : > { %v390_v29 = vpop.permute.xlu1 %389  ;;  %v174_v30 = vpop.permute.xlu0 %173 }
 0x141   : > { %489 = vrot.lane.b32.xlu0 %v616_v25, %s792_s16  ;;  %v394_v27 = vadd.f32 %v390_v29, %v370_v28  ;;  %v179_v46 = vadd.f32 %v174_v30, %v963_v37 }
 0x144   : > { %v412_v33 = vpop.permute.xlu1 %411  ;;  %v186_v34 = vpop.permute.xlu0 %185 }
 0x145   : > { %v416_v36 = vadd.f32 %v412_v33, %v394_v27  ;;  %511 = vrot.lane.b32.xlu0 %v622_v31, %s792_s16  ;;  %v191_v51 = vadd.f32 %v186_v34, %v179_v46 }
 0x147   : > { %v617_v38 = vclamps-f32 %v416_v36, 3.0 }
 0x148   : > { %v176_v40 = vpop.permute.xlu1 %175  ;;  %v194_v41 = vpop.permute.xlu0 %193 }
 0x149   : > { %491 = vrot.lane.b32.xlu1 %v617_v38, %s792_s16  ;;  %v199_v26 = vadd.f32 %v194_v41, %v191_v51  ;;  %v180_v57 = vadd.f32 %v176_v40, %v970_v39 }
 0x14c   : > { %v188_v42 = vpop.permute.xlu1 %187  ;;  %v204_v44 = vpop.permute.xlu0 %203 }
 0x14d   : > { %513 = vrot.lane.b32.xlu1 %v623_v32, %s792_s16  ;;  %v209_v55 = vadd.f32 %v204_v44, %v199_v26  ;;  %v192_v60 = vadd.f32 %v188_v42, %v180_v57 }
 0x14f   : > { %v215_v63 = vadd.f32 %v977_v43, %v209_v55 }
 0x150   : > { %v196_v48 = vpop.permute.xlu1 %195  ;;  %v226_v50 = vpop.permute.xlu0 %225 }
 0x151   : > { %v200_v0 = vadd.f32 %v196_v48, %v192_v60  ;;  %v231_v3 = vadd.f32 %v226_v50, %v215_v63 }
 0x154   : > { %v206_v52 = vpop.permute.xlu1 %205  ;;  %v250_v54 = vpop.permute.xlu0 %249 }
 0x155   : > { %v210_v4 = vadd.f32 %v206_v52, %v200_v0  ;;  %v255_v37 = vadd.f32 %v250_v54, %v231_v3 }
 0x157   : > { %v216_v7 = vadd.f32 %v985_v45, %v210_v4 }
 0x158   : > { %v228_v58 = vpop.permute.xlu1 %227  ;;  %v268_v59 = vpop.permute.xlu0 %267 }
 0x159   : > { %v273_v8 = vadd.f32 %v268_v59, %v255_v37  ;;  %v232_v39 = vadd.f32 %v228_v58, %v216_v7 }
 0x15c   : > { %v252_v1 = vpop.permute.xlu1 %251  ;;  %v278_v2 = vpop.permute.xlu0 %277 }
 0x15d   : > { %v283_v9 = vadd.f32 %v278_v2, %v273_v8  ;;  %v256_v12 = vadd.f32 %v252_v1, %v232_v39 }
 0x15f   : > { %v289_v13 = vadd.f32 %v993_v47, %v283_v9 }
 0x160   : > { %v270_v5 = vpop.permute.xlu1 %269  ;;  %v300_v6 = vpop.permute.xlu0 %299 }
 0x161   : > { %v274_v16 = vadd.f32 %v270_v5, %v256_v12  ;;  %v305_v17 = vadd.f32 %v300_v6, %v289_v13 }
 0x164   : > { %v280_v10 = vpop.permute.xlu1 %279  ;;  %v322_v11 = vpop.permute.xlu0 %321 }
 0x165   : > { %v284_v15 = vadd.f32 %v280_v10, %v274_v16  ;;  %v327_v22 = vadd.f32 %v322_v11, %v305_v17 }
 0x167   : > { %v290_v23 = vadd.f32 %v1001_v49, %v284_v15 }
 0x168   : > { %v302_v14 = vpop.permute.xlu1 %301  ;;  %v342_v43 = vpop.permute.xlu0 %341 }
 0x169   : > { %v347_v24 = vadd.f32 %v342_v43, %v327_v22  ;;  %v306_v28 = vadd.f32 %v302_v14, %v290_v23 }
 0x16c   : > { %v324_v18 = vpop.permute.xlu1 %323  ;;  %v354_v19 = vpop.permute.xlu0 %353 }
 0x16d   : > { %v359_v25 = vadd.f32 %v354_v19, %v347_v24  ;;  %v328_v31 = vadd.f32 %v324_v18, %v306_v28 }
 0x16f   : > { %v365_v47 = vadd.f32 %v1012_v53, %v359_v25 }
 0x170   : > { %v344_v45 = vpop.permute.xlu1 %343  ;;  %v376_v20 = vpop.permute.xlu0 %375 }
 0x171   : > { %v348_v27 = vadd.f32 %v344_v45, %v328_v31  ;;  %v381_v35 = vadd.f32 %v376_v20, %v365_v47 }
 0x174   : > { %v356_v29 = vpop.permute.xlu1 %355  ;;  %v400_v30 = vpop.permute.xlu0 %399 }
 0x175   : > { %v360_v36 = vadd.f32 %v356_v29, %v348_v27  ;;  %v405_v21 = vadd.f32 %v400_v30, %v381_v35 }
 0x177   : > { %v366_v49 = vadd.f32 %v1020_v56, %v360_v36 }
 0x178   : > { %v378_v33 = vpop.permute.xlu1 %377  ;;  %v418_v34 = vpop.permute.xlu0 %417 }
 0x179   : > { %v423_v41 = vadd.f32 %v418_v34, %v405_v21  ;;  %v382_v46 = vadd.f32 %v378_v33, %v366_v49 }
 0x17c   : > { %v402_v38 = vpop.permute.xlu1 %401  ;;  %v428_v40 = vpop.permute.xlu0 %427 }
 0x17d   : > { %v433_v32 = vadd.f32 %v428_v40, %v423_v41  ;;  %v406_v48 = vadd.f32 %v402_v38, %v382_v46 }
 0x17f   : > { %v439_v50 = vadd.f32 %v1027_v61, %v433_v32 }
 0x180   : > { %v420_v42 = vpop.permute.xlu1 %419  ;;  %v446_v44 = vpop.permute.xlu0 %445 }
 0x181   : > { %v424_v26 = vadd.f32 %v420_v42, %v406_v48  ;;  %v451_v52 = vadd.f32 %v446_v44, %v439_v50 }
 0x184   : > { %v430_v51 = vpop.permute.xlu1 %429  ;;  %v458_v53 = vpop.permute.xlu0 %457 }
 0x185   : > { %v434_v54 = vadd.f32 %v430_v51, %v424_v26  ;;  %v463_v58 = vadd.f32 %v458_v53, %v451_v52 }
 0x187   : > { %v440_v59 = vadd.f32 %v1033_v62, %v434_v54 }
 0x188   : > { %v448_v55 = vpop.permute.xlu1 %447  ;;  %v466_v57 = vpop.permute.xlu0 %465 }
 0x189   : > { %v471_v56 = vadd.f32 %v466_v57, %v463_v58  ;;  %v452_v1 = vadd.f32 %v448_v55, %v440_v59 }
 0x18c   : > { %v460_v60 = vpop.permute.xlu1 %459  ;;  %v476_v63 = vpop.permute.xlu0 %475 }
 0x18d   : > { %v481_v0 = vadd.f32 %v476_v63, %v471_v56  ;;  %v464_v3 = vadd.f32 %v460_v60, %v452_v1 }
 0x18f   : > { %v618_v2 = vclamps-f32 %v481_v0, 3.0 }
 0x190   : > { %v468_v61 = vpop.permute.xlu1 %467 }
 0x191   : > { %620 = vst.msk [vmem:[%s134_s30 + $0x10] sm:$0xff] %vm495_vm3, %v618_v2  ;;  %v472_v4 = vadd.f32 %v468_v61, %v464_v3 }
 0x194   : > { %v478_v37 = vpop.permute.xlu1 %477 }
 0x195   : > { %v482_v5 = vadd.f32 %v478_v37, %v472_v4 }
 0x197   : > { %v619_v6 = vclamps-f32 %v482_v5, 3.0 }
 0x199   : > { %621 = vst.msk [vmem:[%s134_s30 + $0x18] sm:$0xff] %vm495_vm3, %v619_v6 }
 0x1b3   : > { %v490_v62 = vpop.permute.xlu0 %489 }
 0x1b4   : > { %496 = vst.msk [vmem:[%s134_s30] sm:$0xff] %vm495_vm3, %v490_v62 }
 0x1b7   : > { %v512_v7 = vpop.permute.xlu0 %511 }
 0x1b8   : > { %624 = vst.msk [vmem:[%s134_s30 + $0x20] sm:$0xff] %vm495_vm3, %v512_v7 }
 0x1bb   : > { %v492_v8 = vpop.permute.xlu1 %491 }
 0x1bc   : > { %497 = vst.msk [vmem:[%s134_s30 + $0x8] sm:$0xff] %vm495_vm3, %v492_v8 }
 0x1bf   : > { %v514_v9 = vpop.permute.xlu1 %513 }
 0x1c0   : > { %625 = vst.msk [vmem:[%s134_s30 + $0x28] sm:$0xff] %vm495_vm3, %v514_v9 }
 0x1c1   : > { %732 = shalt.err (!%p729_p2)
}
 0x1c2   : > { %s733_s21 = scalar_lea.hbm %s1072_s11, 768  ;;  %s737_s29 = scalar_lea.hbm %s1118_s1, 1536 }
 0x1c3   : > { %p734_p4 = scmp.ne.s32.totalorder %s1072_s11, %s733_s21  ;;  %p738_p9 = scmp.lt.u32.totalorder %s1072_s11, %s1118_s1 }
 0x1c4   : > { %p739_p1 = scmp.lt.u32.totalorder %s737_s29, %s733_s21  ;;  %p741_p6 = scmp.lt.u32.totalorder %s733_s21, %s1072_s11 }
 0x1c5   : > { %p735_p5 = pnand %p734_p4, %p1124_p11 }
 0x1c6   : > { %p740_p3 = por %p739_p1, %p738_p9 }
 0x1c7   : > { %p736_p7 = pneg %p735_p5 }
 0x1c8   : > { %p742_p12 = por %p741_p6, %p740_p3 }
 0x1ca   : > { %p743_p13 = pnand %p742_p12, %p736_p7 }
 0x1cc   : > { %746 = shalt.err (!%p743_p13)
}
 0x1cd   : > { %s797_s25 = smov 128   ;;  %s798_s27 = smov 8  }
 0x1ce   : > { %635 = dma.vmem_to_hbm [thread:$0]  (%p1124_p11), %s1066_s2, 768, %s1072_s11, %s521_s13, %s797_s25, %s797_s25, %s798_s27  }
 0x1cf PF: > { %s549_s28 = sand.u32 1, %s773_s6   ;;  %p1125_p8 = scmp.ne.s32.totalorder %s1122_s18, 0 }
 0x1d0   : > { %p1126_p10 = scmp.ge.s32.totalorder %s785_s9, 2  ;;  %s550_s30 = scalar_lea.sflag [#allocation5], %s549_s28 }
 0x1d2   : > { %p642_p0 = pnand %p1126_p10, %p1125_p8 }
 0x1d4   : > { %768 = dma.done.wait (!%p642_p0), %s550_s30, 768  }
 0x1d5   : > { %770 = vsyncadd (!%p642_p0), %s550_s30, 4294966528  ;;  %p14_p2 = scmp.ge.s32.totalorder %s834_s12, 4   ;;  %s1127_s6 = smov %s777_s7 }
 0x1d6   : > { %s1128_s7 = smov %s781_s8  ;;  %s1129_s8 = smov %s846_s15 }
 0x1d7   : > { %s1130_s9 = smov %s834_s12  ;;  %16 = sbr.rel (!%p14_p2) target bundleno = 5 (0x5), region = 73 }
 0x1de   :  { %555 = vsyncpa [#allocation4], 1 }
 0x1df   :  { %557 = vsyncpa [#allocation4 + $0x1], 1 }
 0x1e0   :  { %558 = vsyncpa [#allocation5], 1 }
 0x1e1   :  { %560 = vsyncpa [#allocation5 + $0x1], 1 }

</bundles_post_ra>
